<compile_context>
chip_gen: v6e
topology: v6e:2x2x1
jax: 0.10.0
libtpu: 0.0.40
codegen_flags: <defaults>
</compile_context>

<pallas_src>
import math

import jax
import jax.numpy as jnp
from jax.experimental import pallas as pl
from jax.experimental.pallas import tpu as pltpu


def _round_up(a, b):
    return ((a + b - 1) // b) * b


def _make_kernel(in_ft, tk, resident_x):
    def kernel(adj_ref, xk_ref, xs_ref, w_ref, b_ref, o_ref, acc_ref):
        # adj_ref: (tm, tk)                 adjacency tile (caller dtype) -> bf16 here
        # xk_ref:  (tk, in_ft)/(np_c, in_ft) neighbor-feature rows (streamed / resident)
        # xs_ref:  (tm, in_ft)              self feature rows for this row block
        # w_ref:   (2*in_ft, out_ft)        weight
        # b_ref:   (1, out_ft)              bias
        # o_ref:   (tm, out_ft)             output rows
        # acc_ref: (tm, in_ft) f32          VMEM accumulator for A @ x
        k = pl.program_id(1)

        @pl.when(k == 0)
        def _init():
            acc_ref[...] = jnp.zeros_like(acc_ref)

        a = adj_ref[...].astype(jnp.bfloat16)
        if resident_x:
            start = pl.multiple_of(k * tk, tk)
            xk = xk_ref[pl.ds(start, tk), :]
        else:
            xk = xk_ref[...]
        # neighbor aggregation partial sum: bf16 x bf16 -> f32 accumulate on MXU
        acc_ref[...] += jnp.dot(a, xk.astype(jnp.bfloat16),
                                preferred_element_type=jnp.float32)

        @pl.when(k == pl.num_programs(1) - 1)
        def _finalize():
            w_self = w_ref[:in_ft, :]
            w_neigh = w_ref[in_ft:, :]
            h = (jnp.dot(xs_ref[...].astype(jnp.float32), w_self,
                         preferred_element_type=jnp.float32)
                 + jnp.dot(acc_ref[...], w_neigh,
                           preferred_element_type=jnp.float32)
                 + b_ref[...])
            o_ref[...] = jnp.maximum(h, 0.0).astype(o_ref.dtype)

    return kernel


def graphsage_conv(x, norm_adj, weight, bias=None, *, tm=512, tk=2048,
                   resident_x=None):
    """relu(concat([x, norm_adj @ x], 1) @ weight + bias) via a fused kernel."""
    N, in_ft = x.shape
    two_in, out_ft = weight.shape
    assert two_in == 2 * in_ft
    assert norm_adj.shape == (N, N)
    out_dtype = x.dtype

    # --- tile sizing --------------------------------------------------------
    # tm: multiple of 16 (bf16 sublane packing) and capped so the "parallel"
    # row axis has >= 2 blocks (v7x has 2 TensorCores).  tk: multiple of 128.
    tm = max(16, min(int(tm), _round_up(-(-N // 2), 16)))
    tk = max(128, min(int(tk), _round_up(N, 128)))
    np_r = _round_up(N, tm)   # padded rows of A / output rows
    np_c = _round_up(N, tk)   # padded cols of A / rows of x used in aggregation

    # --- operand prep (no dtype re-materialization of the N^2 adjacency) ----
    adj = norm_adj
    if adj.dtype not in (jnp.bfloat16, jnp.float32):
        adj = adj.astype(jnp.float32)
    if adj.shape != (np_r, np_c):
        # TODO(synk): masked last tiles would avoid this extra N^2 pad pass.
        adj = jnp.pad(adj, ((0, np_r - N), (0, np_c - N)))

    xs = x if np_r == N else jnp.pad(x, ((0, np_r - N), (0, 0)))
    xk = x if np_c == N else jnp.pad(x, ((0, np_c - N), (0, 0)))

    if bias is None:
        bias = jnp.zeros((out_ft,), jnp.float32)
    w = weight.astype(jnp.float32)
    b2d = bias.reshape(1, out_ft).astype(jnp.float32)

    x_item = jnp.dtype(x.dtype).itemsize
    adj_item = jnp.dtype(adj.dtype).itemsize
    out_item = jnp.dtype(out_dtype).itemsize

    # Keep all of x resident in VMEM (fetched once, never re-streamed per row
    # block) when small enough; otherwise stream (tk, in_ft) chunks per k-step.
    if resident_x is None:
        resident_x = (2 * np_c * in_ft * x_item) <= (12 << 20)

    if resident_x:
        xk_spec = pl.BlockSpec((np_c, in_ft), lambda i, k: (0, 0))
        xk_buf_bytes = 2 * np_c * in_ft * x_item
    else:
        xk_spec = pl.BlockSpec((tk, in_ft), lambda i, k: (k, 0))
        xk_buf_bytes = 2 * tk * in_ft * x_item

    # --- VMEM budget (double-buffered inputs/outputs + scratch) -------------
    need = (2 * tm * tk * adj_item
            + xk_buf_bytes
            + 2 * tm * in_ft * x_item
            + 2 * tm * out_ft * out_item
            + 2 * (2 * in_ft * out_ft + out_ft) * 4
            + tm * in_ft * 4)
    # Defaults keep this <= ~32 MiB (safe on v7x / 64 MiB VMEM); raise tile
    # sizes (and with them this limit) only on v5e/v6e (128 MiB VMEM).
    vmem_limit = min(max(int(need * 1.25) + (4 << 20), 32 << 20), 100 << 20)

    grid = (np_r // tm, np_c // tk)

    cost = pl.CostEstimate(
        flops=2 * N * N * in_ft + 4 * N * in_ft * out_ft,
        transcendentals=0,
        bytes_accessed=(adj.size * adj_item + xk.size * x_item
                        + xs.size * x_item + w.size * 4 + b2d.size * 4
                        + np_r * out_ft * out_item),
    )

    out = pl.pallas_call(
        _make_kernel(in_ft, tk, resident_x),
        out_shape=jax.ShapeDtypeStruct((np_r, out_ft), out_dtype),
        grid_spec=pltpu.PrefetchScalarGridSpec(
            num_scalar_prefetch=0,
            grid=grid,
            in_specs=[
                pl.BlockSpec((tm, tk), lambda i, k: (i, k)),            # A tile
                xk_spec,                                                 # x (aggregation)
                pl.BlockSpec((tm, in_ft), lambda i, k: (i, 0)),          # x self rows
                pl.BlockSpec((2 * in_ft, out_ft), lambda i, k: (0, 0)),  # weight
                pl.BlockSpec((1, out_ft), lambda i, k: (0, 0)),          # bias
            ],
            out_specs=pl.BlockSpec((tm, out_ft), lambda i, k: (i, 0)),
            scratch_shapes=[pltpu.VMEM((tm, in_ft), jnp.float32)],
        ),
        compiler_params=pltpu.CompilerParams(
            dimension_semantics=("parallel", "arbitrary"),
            vmem_limit_bytes=vmem_limit,
        ),
        cost_estimate=cost,
    )(adj, xk, xs, w, b2d)

    return out[:N]


def _reference(x, norm_adj, weight, bias, agg_dtype=jnp.float32):
    emb = jnp.dot(norm_adj.astype(agg_dtype), x.astype(agg_dtype),
                  preferred_element_type=jnp.float32)
    cat = jnp.concatenate([x, emb], axis=1)
    h = cat @ weight + bias
    return jnp.maximum(h, 0.0)


if __name__ == "__main__":
    key = jax.random.PRNGKey(0)
    N, in_ft, out_ft = 256, 64, 128

    k_x, k_adj, k_w, k_b = jax.random.split(key, 4)

    x = jax.random.normal(k_x, (N, in_ft), dtype=jnp.float32)

    # dense, row-normalized "adjacency" (dense stand-in for the sparse matrix)
    raw = (jax.random.uniform(k_adj, (N, N)) > 0.9).astype(jnp.float32)
    raw = raw + jnp.eye(N, dtype=jnp.float32)
    norm_adj = raw / jnp.sum(raw, axis=1, keepdims=True)

    # param init matching reset_parameters(): U(-stdv, stdv), stdv = 1/sqrt(out_ft)
    stdv = 1.0 / math.sqrt(out_ft)
    weight = jax.random.uniform(
        k_w, (2 * in_ft, out_ft), minval=-stdv, maxval=stdv, dtype=jnp.float32
    )
    bias = jax.random.uniform(
        k_b, (out_ft,), minval=-stdv, maxval=stdv, dtype=jnp.float32
    )

    # Small tiles so the test exercises the (row-block, K-block) accumulation
    # path and a >1 "parallel" row axis.  Run both x paths (resident + streamed).
    out_res = graphsage_conv(x, norm_adj, weight, bias, tm=128, tk=128)
    out_res = jax.block_until_ready(out_res)
    out_str = graphsage_conv(x, norm_adj, weight, bias, tm=128, tk=128,
                             resident_x=False)
    out_str = jax.block_until_ready(out_str)

    ref_bf16 = _reference(x, norm_adj, weight, bias, agg_dtype=jnp.bfloat16)
    ref_f32 = _reference(x, norm_adj, weight, bias, agg_dtype=jnp.float32)

    for out in (out_res, out_str):
        assert out.shape == (N, out_ft)
        assert jnp.allclose(out, ref_bf16, atol=1e-3, rtol=1e-3), \
            "mismatch vs bf16-agg reference"
        assert jnp.allclose(out, ref_f32, atol=2e-2, rtol=2e-2), \
            "mismatch vs f32 reference"
    assert jnp.allclose(out_res, out_str), "resident vs streamed path mismatch"

    print("KERNEL_OK")
</pallas_src>

<mosaic_0001>
module attributes {stable_mosaic.version = 11 : i64} {
  func.func @kernel(%arg0: i32, %arg1: i32, %arg2: memref<128x128xf32, #tpu.memory_space<vmem>>, %arg3: memref<256x64xf32, #tpu.memory_space<vmem>>, %arg4: memref<128x64xf32, #tpu.memory_space<vmem>>, %arg5: memref<128x128xf32, #tpu.memory_space<vmem>>, %arg6: memref<1x128xf32, #tpu.memory_space<vmem>>, %arg7: memref<128x128xf32, #tpu.memory_space<vmem>>, %arg8: memref<128x64xf32, #tpu.memory_space<vmem>>) attributes {dimension_semantics = [#tpu.dimension_semantics<parallel>, #tpu.dimension_semantics<arbitrary>], iteration_bounds = array<i64: 2, 2>, scalar_prefetch = 0 : i64, scratch_operands = 1 : i64, tpu.core_type = #tpu.core_type<tc>, window_params = [{transform_indices = @transform_0, window_bounds = array<i64: 128, 128>}, {pipeline_mode = #tpu.pipeline_mode<synchronous>, transform_indices = @transform_1, window_bounds = array<i64: 256, 64>}, {transform_indices = @transform_2, window_bounds = array<i64: 128, 64>}, {pipeline_mode = #tpu.pipeline_mode<synchronous>, transform_indices = @transform_3, window_bounds = array<i64: 128, 128>}, {pipeline_mode = #tpu.pipeline_mode<synchronous>, transform_indices = @transform_4, window_bounds = array<i64: 1, 128>}, {transform_indices = @transform_5, window_bounds = array<i64: 128, 128>}]} {
    %c0_i32 = arith.constant 0 : i32
    %0 = arith.cmpi eq, %arg1, %c0_i32 : i32
    %1 = arith.extui %0 : i1 to i32
    %c0_i32_0 = arith.constant 0 : i32
    %2 = arith.cmpi ne, %1, %c0_i32_0 : i32
    scf.if %2 {
      %cst_8 = arith.constant 0.000000e+00 : f32
      %17 = vector.broadcast %cst_8 : f32 to vector<128x64xf32>
      %c0_9 = arith.constant 0 : index
      %c0_10 = arith.constant 0 : index
      %18 = vector.load %arg8[%c0_9, %c0_10] : memref<128x64xf32, #tpu.memory_space<vmem>>, vector<128x64xf32>
      tpu.vector_store %arg8[%c0_9, %c0_10], %17 {strides = array<i32>} : memref<128x64xf32, #tpu.memory_space<vmem>>, vector<128x64xf32>,
    } else {
    }
    %c0 = arith.constant 0 : index
    %c0_1 = arith.constant 0 : index
    %3 = vector.load %arg2[%c0, %c0_1] : memref<128x128xf32, #tpu.memory_space<vmem>>, vector<128x128xf32>
    %4 = arith.truncf %3 : vector<128x128xf32> to vector<128x128xbf16>
    %c128_i32 = arith.constant 128 : i32
    %5 = arith.muli %arg1, %c128_i32 : i32
    %6 = tpu.assume_multiple %5, 128 : i32
    %7 = arith.index_cast %6 : i32 to index
    %c0_2 = arith.constant 0 : index
    %8 = vector.load %arg3[%7, %c0_2] : memref<256x64xf32, #tpu.memory_space<vmem>>, vector<128x64xf32>
    %c0_3 = arith.constant 0 : index
    %c0_4 = arith.constant 0 : index
    %9 = vector.load %arg8[%c0_3, %c0_4] : memref<128x64xf32, #tpu.memory_space<vmem>>, vector<128x64xf32>
    %10 = arith.truncf %8 : vector<128x64xf32> to vector<128x64xbf16>
    %cst = arith.constant dense<0.000000e+00> : vector<128x64xf32>
    %11 = tpu.matmul %4, %10, %cst {dimension_numbers = #tpu.dot_dimension_numbers<[1], [0], [0], [1], [0, 0, 1, 1], [], []>} : vector<128x128xbf16>, vector<128x64xbf16>, vector<128x64xf32> -> vector<128x64xf32>
    %12 = arith.addf %9, %11 : vector<128x64xf32>
    %c0_5 = arith.constant 0 : index
    %c0_6 = arith.constant 0 : index
    %13 = vector.load %arg8[%c0_5, %c0_6] : memref<128x64xf32, #tpu.memory_space<vmem>>, vector<128x64xf32>
    tpu.vector_store %arg8[%c0_5, %c0_6], %12 {strides = array<i32>} : memref<128x64xf32, #tpu.memory_space<vmem>>, vector<128x64xf32>,
    %c1_i32 = arith.constant 1 : i32
    %14 = arith.cmpi eq, %arg1, %c1_i32 : i32
    %15 = arith.extui %14 : i1 to i32
    %c0_i32_7 = arith.constant 0 : i32
    %16 = arith.cmpi ne, %15, %c0_i32_7 : i32
    scf.if %16 {
      %c0_8 = arith.constant 0 : index
      %c0_9 = arith.constant 0 : index
      %17 = vector.load %arg5[%c0_8, %c0_9] : memref<128x128xf32, #tpu.memory_space<vmem>>, vector<64x128xf32>
      %c64 = arith.constant 64 : index
      %c0_10 = arith.constant 0 : index
      %18 = vector.load %arg5[%c64, %c0_10] : memref<128x128xf32, #tpu.memory_space<vmem>>, vector<64x128xf32>
      %c0_11 = arith.constant 0 : index
      %c0_12 = arith.constant 0 : index
      %19 = vector.load %arg4[%c0_11, %c0_12] : memref<128x64xf32, #tpu.memory_space<vmem>>, vector<128x64xf32>
      %cst_13 = arith.constant dense<0.000000e+00> : vector<128x128xf32>
      %20 = tpu.matmul %19, %17, %cst_13 {dimension_numbers = #tpu.dot_dimension_numbers<[1], [0], [0], [1], [0, 0, 1, 1], [], []>} : vector<128x64xf32>, vector<64x128xf32>, vector<128x128xf32> -> vector<128x128xf32>
      %c0_14 = arith.constant 0 : index
      %c0_15 = arith.constant 0 : index
      %21 = vector.load %arg8[%c0_14, %c0_15] : memref<128x64xf32, #tpu.memory_space<vmem>>, vector<128x64xf32>
      %cst_16 = arith.constant dense<0.000000e+00> : vector<128x128xf32>
      %22 = tpu.matmul %21, %18, %cst_16 {dimension_numbers = #tpu.dot_dimension_numbers<[1], [0], [0], [1], [0, 0, 1, 1], [], []>} : vector<128x64xf32>, vector<64x128xf32>, vector<128x128xf32> -> vector<128x128xf32>
      %23 = arith.addf %20, %22 : vector<128x128xf32>
      %c0_17 = arith.constant 0 : index
      %c0_18 = arith.constant 0 : index
      %24 = vector.load %arg6[%c0_17, %c0_18] : memref<1x128xf32, #tpu.memory_space<vmem>>, vector<1x128xf32>
      %25 = vector.broadcast %24 : vector<1x128xf32> to vector<128x128xf32>
      %26 = arith.addf %23, %25 : vector<128x128xf32>
      %cst_19 = arith.constant 0.000000e+00 : f32
      %27 = vector.broadcast %cst_19 : f32 to vector<128x128xf32>
      %28 = arith.maximumf %26, %27 : vector<128x128xf32>
      %c0_20 = arith.constant 0 : index
      %c0_21 = arith.constant 0 : index
      %29 = vector.load %arg7[%c0_20, %c0_21] : memref<128x128xf32, #tpu.memory_space<vmem>>, vector<128x128xf32>
      tpu.vector_store %arg7[%c0_20, %c0_21], %28 {strides = array<i32>} : memref<128x128xf32, #tpu.memory_space<vmem>>, vector<128x128xf32>,
    } else {
    }
    return
  }
  func.func @transform_0(%arg0: i32, %arg1: i32) -> (i32, i32) {
    %c0_i32 = arith.constant 0 : i32
    return %arg0, %arg1 : i32, i32
  }
  func.func @transform_1(%arg0: i32, %arg1: i32) -> (i32, i32) {
    %c0_i32 = arith.constant 0 : i32
    %c0_i32_0 = arith.constant 0 : i32
    %c0_i32_1 = arith.constant 0 : i32
    return %c0_i32, %c0_i32_0 : i32, i32
  }
  func.func @transform_2(%arg0: i32, %arg1: i32) -> (i32, i32) {
    %c0_i32 = arith.constant 0 : i32
    %c0_i32_0 = arith.constant 0 : i32
    return %arg0, %c0_i32 : i32, i32
  }
  func.func @transform_3(%arg0: i32, %arg1: i32) -> (i32, i32) {
    %c0_i32 = arith.constant 0 : i32
    %c0_i32_0 = arith.constant 0 : i32
    %c0_i32_1 = arith.constant 0 : i32
    return %c0_i32, %c0_i32_0 : i32, i32
  }
  func.func @transform_4(%arg0: i32, %arg1: i32) -> (i32, i32) {
    %c0_i32 = arith.constant 0 : i32
    %c0_i32_0 = arith.constant 0 : i32
    %c0_i32_1 = arith.constant 0 : i32
    return %c0_i32, %c0_i32_0 : i32, i32
  }
  func.func @transform_5(%arg0: i32, %arg1: i32) -> (i32, i32) {
    %c0_i32 = arith.constant 0 : i32
    %c0_i32_0 = arith.constant 0 : i32
    return %arg0, %c0_i32 : i32, i32
  }
}

</mosaic_0001>

<bundles_post_ra>
// kernel: tpu_custom_call.1
= control target key start
LH: loop header
LB: loop body
LE: loop exit
PB: predicated region body
PF: predicated region fallthrough
CT: control target
= control target key end

     0   :  { %s2067_s0 = inlined_call_operand.vmem [shape: f32[256,256], index: 0, kind: input, shape index: {}]   ;;  %s2068_s1 = inlined_call_operand.vmem [shape: f32[256,64], index: 1, kind: input, shape index: {}]   ;;  %s2069_s2 = inlined_call_operand.vmem [shape: f32[256,64], index: 2, kind: input, shape index: {}]   ;;  %s2070_s3 = inlined_call_operand.vmem [shape: f32[128,128], index: 3, kind: input, shape index: {}]   ;;  %s2071_s4 = inlined_call_operand.vmem [shape: f32[1,128], index: 4, kind: input, shape index: {}]   ;;  %s2072_s5 = inlined_call_operand.hbm [shape: f32[256,128], index: 5, kind: output, shape index: {}]  }
   0x1   :  { %2074 = sst [smem:[#allocation8_spill]] %s2067_s0 }
   0x2   :  { %10 = vsyncpa [#allocation5], 0 }
   0x3   :  { %12 = vsyncpa [#allocation5 + $0x1], 0  ;;  %s1661_s18 = smov 0   ;;  %s1663_s19 = smov 0  }
   0x4   :  { %s1665_s20 = smov 0   ;;  %s1667_s21 = smov 0  }
   0x5   :  { %s1669_s22 = smov 0   ;;  %s1671_s23 = smov 0  }
   0x6   :  { %s1673_s24 = smov 0   ;;  %s1675_s25 = smov 0  }
   0x7   :  { %s1677_s26 = smov 0   ;;  %s1679_s27 = smov 0  }
   0x8 LB: > { %s1179_s28 = sadd.s32 4294967295, %s1625_s27   ;;  %s1180_s29 = sadd.s32 4294967294, %s1625_s27   ;;  %s1625_s27 = sphi %s1679_s27, %s18_s27   ;;  %s1621_s26 = sphi %s1677_s26, %s2089_s26   ;;  %s1617_s25 = sphi %s1675_s25, %s2088_s25   ;;  %s1613_s24 = sphi %s1673_s24, %s2087_s24   ;;  %s1609_s23 = sphi %s1671_s23, %s2086_s23   ;;  %s1605_s22 = sphi %s1669_s22, %s2085_s22   ;;  %s1601_s21 = sphi %s1667_s21, %s2084_s21   ;;  %s1597_s20 = sphi %s1665_s20, %s2083_s20   ;;  %s1593_s19 = sphi %s1663_s19, %s2082_s19   ;;  %s1589_s18 = sphi %s1661_s18, %s2081_s18  }
   0x9   : > { %s27_s30 = sadd.s32 1, %s1617_s25  ;;  %s30_s6 = sadd.s32 1, %s1621_s26 }
   0xa   : > { %p28_p0 = scmp.ge.s32.totalorder %s27_s30, 2  ;;  %s39_s7 = sadd.s32 1, %s1605_s22 }
   0xb   : > { %p46_p1 = scmp.ne.s32.totalorder %s1605_s22, %s1601_s21  ;;  %p47_p2 = scmp.eq.s32.totalorder %s1625_s27, 0 }
   0xc   : > { %s2091_s30 = smov (%p28_p0, %s27_s30), 0  ;;  %s2093_s6 = smov (!%p28_p0, %s30_s6), %s1621_s26 }
   0xd   : > { %s35_s8 = ssub.s32 %s1617_s25, %s2091_s30  ;;  %p1724_p3 = por %p47_p2, %p46_p1 }
   0xe   : > { %p32_p4 = scmp.ge.s32.totalorder %s2093_s6, 2  ;;  %s154_s10 = sadd.s32 1, %s1597_s20 }
   0xf   : > { %p164_p5 = scmp.ne.s32.totalorder %s1597_s20, %s1593_s19  ;;  %p165_p6 = scmp.eq.s32.totalorder %s1179_s28, 3 }
  0x10   : > { %s2095_s6 = smov (%p32_p4, %s2093_s6), 0  ;;  %p170_p8 = scmp.ne.s32.totalorder %s1593_s19, %s1589_s18 }
  0x11   : > { %2076 = sst [smem:[#allocation7_spill]] %s2095_s6  ;;  %p1733_p7 = por %p165_p6, %p164_p5 }
  0x12   : > { %s34_s12 = ssub.s32 %s1621_s26, %s2095_s6  ;;  %p171_p9 = scmp.eq.s32.totalorder %s1180_s29, 3 }
  0x13   : > { %s36_s13 = sor.u32 %s35_s8, %s34_s12  ;;  %p152_p10 = scmp.eq.s32.totalorder %s34_s12, 0 }
  0x14   : > { %p37_p11 = scmp.eq.s32.totalorder %s36_s13, 0  ;;  %p1741_p12 = por %p171_p9, %p170_p8 }
  0x15   : > { %s1746_s15 = scalar_select %p152_p10, %s1597_s20, %s154_s10  }
  0x16   : > { %s1749_s16 = scalar_select %p37_p11, %s1605_s22, %s39_s7  }
  0x17   : > { %p1182_p13 = scmp.ge.s32.totalorder %s1625_s27, 4 }
  0x19   : > { %196 = sbr.rel (%p1182_p13) target bundleno = 48 (0x30), region = 28 }
  0x1e   : > { %199 = sbr.rel (!%p1724_p3) target bundleno = 48 (0x30), region = 32  ;;  %s201_s17 = sand.u32 (%p1724_p3), 1, %s1605_s22  }
  0x1f   : > { %s1233_s28 = sshll.u32 (%p1724_p3), %s1621_s26, 5  ;;  %s1183_s29 = sshll.u32 (%p1724_p3), %s201_s17, 7 }
  0x20   : > { %s206_s8 = sadd.s32 (%p1724_p3), %s1617_s25, %s1233_s28  ;;  %s2079_s0 = sld [smem:[#allocation8_spill]] (%p1724_p3) }
  0x21   : > { %s1186_s12 = sshll.u32 (%p1724_p3), %s206_s8, 3  ;;  %s203_s7 = scalar_lea.vmem (%p1724_p3), [#allocation3], %s1183_s29 }
  0x26   : > { %s1760_s10 = scalar_lea.vmem %s2079_s0, %s1186_s12 }
  0x27   : > { %v267_v0 = vld [vmem:[%s1760_s10] sm:$0xff]  ;;  %v269_v1 = vld [vmem:[%s1760_s10 + $0x10] sm:$0xff] }
  0x28   : > { %v271_v2 = vld [vmem:[%s1760_s10 + $0x20] sm:$0xff]  ;;  %268 = vst [vmem:[%s203_s7] sm:$0xff] %v267_v0  ;;  %270 = vst [vmem:[%s203_s7 + $0x8] sm:$0xff] %v269_v1  ;;  %v273_v3 = vld [vmem:[%s1760_s10 + $0x30] sm:$0xff] }
  0x29   : > { %272 = vst [vmem:[%s203_s7 + $0x10] sm:$0xff] %v271_v2  ;;  %v275_v4 = vld [vmem:[%s1760_s10 + $0x40] sm:$0xff]  ;;  %v277_v5 = vld [vmem:[%s1760_s10 + $0x50] sm:$0xff]  ;;  %274 = vst [vmem:[%s203_s7 + $0x18] sm:$0xff] %v273_v3 }
  0x2a   : > { %276 = vst [vmem:[%s203_s7 + $0x20] sm:$0xff] %v275_v4  ;;  %278 = vst [vmem:[%s203_s7 + $0x28] sm:$0xff] %v277_v5  ;;  %v279_v6 = vld [vmem:[%s1760_s10 + $0x60] sm:$0xff]  ;;  %v281_v7 = vld [vmem:[%s1760_s10 + $0x70] sm:$0xff] }
  0x2b   : > { %v283_v8 = vld [vmem:[%s1760_s10 + $0x80] sm:$0xff]  ;;  %280 = vst [vmem:[%s203_s7 + $0x30] sm:$0xff] %v279_v6  ;;  %282 = vst [vmem:[%s203_s7 + $0x38] sm:$0xff] %v281_v7  ;;  %v285_v9 = vld [vmem:[%s1760_s10 + $0x90] sm:$0xff] }
  0x2c   : > { %284 = vst [vmem:[%s203_s7 + $0x40] sm:$0xff] %v283_v8  ;;  %v287_v10 = vld [vmem:[%s1760_s10 + $0xa0] sm:$0xff]  ;;  %v289_v11 = vld [vmem:[%s1760_s10 + $0xb0] sm:$0xff]  ;;  %286 = vst [vmem:[%s203_s7 + $0x48] sm:$0xff] %v285_v9 }
  0x2d   : > { %288 = vst [vmem:[%s203_s7 + $0x50] sm:$0xff] %v287_v10  ;;  %290 = vst [vmem:[%s203_s7 + $0x58] sm:$0xff] %v289_v11  ;;  %v291_v12 = vld [vmem:[%s1760_s10 + $0xc0] sm:$0xff]  ;;  %v293_v13 = vld [vmem:[%s1760_s10 + $0xd0] sm:$0xff] }
  0x2e   : > { %v295_v14 = vld [vmem:[%s1760_s10 + $0xe0] sm:$0xff]  ;;  %292 = vst [vmem:[%s203_s7 + $0x60] sm:$0xff] %v291_v12  ;;  %294 = vst [vmem:[%s203_s7 + $0x68] sm:$0xff] %v293_v13  ;;  %v297_v15 = vld [vmem:[%s1760_s10 + $0xf0] sm:$0xff] }
  0x2f   : > { %296 = vst [vmem:[%s203_s7 + $0x70] sm:$0xff] %v295_v14  ;;  %298 = vst [vmem:[%s203_s7 + $0x78] sm:$0xff] %v297_v15 }
  0x30 PF: > { %p1187_p0 = scmp.ge.s32.totalorder %s1625_s27, 1  ;;  %p312_p1 = scmp.lt.s32.totalorder %s1625_s27, 5 }
  0x32   : > { %p313_p2 = pnand %p1187_p0, %p312_p1 }
  0x33   : > { %s319_s6 = sand.u32 (!%p313_p2), 1, %s1601_s21   ;;  %s348_s9 = sand.u32 (!%p313_p2), 1, %s1593_s19  }
  0x34   : > { %316 = sbr.rel (%p313_p2) target bundleno = 591 (0x24f), region = 74  ;;  %s1188_s17 = sshll.u32 (!%p313_p2), %s319_s6, 7 }
  0x35   : > { %s1189_s28 = sshll.u32 (!%p313_p2), %s348_s9, 7  ;;  %s1190_s29 = sshll.u32 (!%p313_p2), %s1613_s24, 4 }
  0x36   : > { %p353_p3 = scmp.lt.s32.totalorder (!%p313_p2), %s1190_s29, 31  ;;  %s1790_s7 = scalar_lea.vmem (!%p313_p2), [#allocation3], %s1188_s17 }
  0x37   : > { %s1792_s0 = scalar_lea.vmem (!%p313_p2), [#allocation4], %s1189_s28  ;;  %p1192_p4 = scmp.ne.s32.totalorder (!%p313_p2), %s1609_s23, 0 }
  0x39   : > { %s2097_s29 = smov (!%p353_p3, %s1190_s29), 31  ;;  %363 = sbr.rel (%p1192_p4) target bundleno = 71 (0x47), region = 82 }
  0x3a   : > { %s1191_s8 = sshll.u32 %s2097_s29, 3 }
  0x3b   : > { %s1788_s10 = scalar_lea.vmem %s2069_s2, %s1191_s8 }
  0x3e   : > { %vm364_vm0 = vcmask 523264   ;;  %v1627_v16 = vmov 0.0  }
  0x3f   : > { %365 = vst.msk [vmem:[#allocation2] sm:$0xff] %vm364_vm0, %v1627_v16  ;;  %366 = vst.msk [vmem:[#allocation2 + $0x8] sm:$0xff] %vm364_vm0, %v1627_v16 }
  0x40   : > { %367 = vst.msk [vmem:[#allocation2 + $0x10] sm:$0xff] %vm364_vm0, %v1627_v16  ;;  %368 = vst.msk [vmem:[#allocation2 + $0x18] sm:$0xff] %vm364_vm0, %v1627_v16 }
  0x41   : > { %369 = vst.msk [vmem:[#allocation2 + $0x20] sm:$0xff] %vm364_vm0, %v1627_v16  ;;  %370 = vst.msk [vmem:[#allocation2 + $0x28] sm:$0xff] %vm364_vm0, %v1627_v16 }
  0x42   : > { %371 = vst.msk [vmem:[#allocation2 + $0x30] sm:$0xff] %vm364_vm0, %v1627_v16  ;;  %372 = vst.msk [vmem:[#allocation2 + $0x38] sm:$0xff] %vm364_vm0, %v1627_v16 }
  0x43   : > { %373 = vst.msk [vmem:[#allocation2 + $0x40] sm:$0xff] %vm364_vm0, %v1627_v16  ;;  %374 = vst.msk [vmem:[#allocation2 + $0x48] sm:$0xff] %vm364_vm0, %v1627_v16 }
  0x44   : > { %375 = vst.msk [vmem:[#allocation2 + $0x50] sm:$0xff] %vm364_vm0, %v1627_v16  ;;  %376 = vst.msk [vmem:[#allocation2 + $0x58] sm:$0xff] %vm364_vm0, %v1627_v16 }
  0x45   : > { %377 = vst.msk [vmem:[#allocation2 + $0x60] sm:$0xff] %vm364_vm0, %v1627_v16  ;;  %378 = vst.msk [vmem:[#allocation2 + $0x68] sm:$0xff] %vm364_vm0, %v1627_v16 }
  0x46   : > { %379 = vst.msk [vmem:[#allocation2 + $0x70] sm:$0xff] %vm364_vm0, %v1627_v16  ;;  %380 = vst.msk [vmem:[#allocation2 + $0x78] sm:$0xff] %vm364_vm0, %v1627_v16 }
  0x47 PF: > { %s1193_s21 = sshll.u32 %s1609_s23, 7  ;;  %v381_v17 = vld [vmem:[%s1790_s7] sm:$0xff]  ;;  %v382_v18 = vld [vmem:[%s1790_s7 + $0x8] sm:$0xff]  ;;  %v383_v47 = vld [vmem:[%s1790_s7 + $0x10] sm:$0xff]  ;;  %vm560_vm1 = vcmask 523264   ;;  %p1194_p5 = scmp.ne.s32.totalorder %s1609_s23, 1 }
  0x48   : > { %v389_v19 = vld [vmem:[%s1790_s7 + $0x40] sm:$0xff]  ;;  %s1818_s28 = scalar_lea.vmem %s2068_s1, %s1193_s21  ;;  %v397_v20 = vpack.c.bf16 %v382_v18, %v381_v17  ;;  %v390_v21 = vld [vmem:[%s1790_s7 + $0x48] sm:$0xff]  ;;  %v384_v48 = vld [vmem:[%s1790_s7 + $0x18] sm:$0xff] }
  0x49   : > { %v421_v22 = vld [vmem:[%s1818_s28 + $0x70] sm:$0xff]  ;;  %v422_v23 = vld [vmem:[%s1818_s28 + $0x78] sm:$0xff]  ;;  %v419_v24 = vld [vmem:[%s1818_s28 + $0x60] sm:$0xff]  ;;  %v401_v25 = vpack.c.bf16 %v390_v21, %v389_v19  ;;  %v398_v55 = vpack.c.bf16 %v384_v48, %v383_v47 }
  0x4a   : > { %v446_v26 = vpack.c.bf16 %v422_v23, %v421_v22  ;;  %v420_v27 = vld [vmem:[%s1818_s28 + $0x68] sm:$0xff]  ;;  %1315 = vmatprep.mubr.bf16.mxu0 %v397_v20  ;;  %v417_v29 = vld [vmem:[%s1818_s28 + $0x50] sm:$0xff]  ;;  %v418_v30 = vld [vmem:[%s1818_s28 + $0x58] sm:$0xff] }
  0x4b   : > { %v445_v28 = vpack.c.bf16 %v420_v27, %v419_v24  ;;  %1323 = vmatprep.mubr.bf16.mxu1 %v401_v25  ;;  %v444_v31 = vpack.c.bf16 %v418_v30, %v417_v29  ;;  %v415_v32 = vld [vmem:[%s1818_s28 + $0x40] sm:$0xff]  ;;  %v416_v33 = vld [vmem:[%s1818_s28 + $0x48] sm:$0xff]  ;;  %v413_v35 = vld [vmem:[%s1818_s28 + $0x30] sm:$0xff] }
  0x4c   : > { %1299 = vmatprep.subr.bf16.mxu0 %v446_v26  ;;  %1411 = vmatprep.subr.bf16.mxu1 %v446_v26  ;;  %v443_v34 = vpack.c.bf16 %v416_v33, %v415_v32  ;;  %v414_v36 = vld [vmem:[%s1818_s28 + $0x38] sm:$0xff]  ;;  %v411_v38 = vld [vmem:[%s1818_s28 + $0x20] sm:$0xff]  ;;  %v412_v39 = vld [vmem:[%s1818_s28 + $0x28] sm:$0xff] }
  0x4d   : > { %1300 = vmatpush3.bf16.msra.mxu0 %v446_v26  ;;  %1419 = vmatpush3.bf16.msra.mxu1 %v446_v26  ;;  %v442_v37 = vpack.c.bf16 %v414_v36, %v413_v35  ;;  %v441_v40 = vpack.c.bf16 %v412_v39, %v411_v38  ;;  %v409_v41 = vld [vmem:[%s1818_s28 + $0x10] sm:$0xff]  ;;  %v410_v42 = vld [vmem:[%s1818_s28 + $0x18] sm:$0xff]  ;;  %v407_v44 = vld [vmem:[%s1818_s28] sm:$0xff] }
  0x4e   : > { %1301 = vmatprep.subr.bf16.mxu0 %v445_v28  ;;  %1412 = vmatprep.subr.bf16.mxu1 %v445_v28  ;;  %v440_v43 = vpack.c.bf16 %v410_v42, %v409_v41  ;;  %v408_v45 = vld [vmem:[%s1818_s28 + $0x8] sm:$0xff]  ;;  %v391_v49 = vld [vmem:[%s1790_s7 + $0x50] sm:$0xff]  ;;  %v392_v50 = vld [vmem:[%s1790_s7 + $0x58] sm:$0xff] }
  0x4f   : > { %v439_v46 = vpack.c.bf16 %v408_v45, %v407_v44  ;;  %v385_v51 = vld [vmem:[%s1790_s7 + $0x20] sm:$0xff]  ;;  %v386_v52 = vld [vmem:[%s1790_s7 + $0x28] sm:$0xff]  ;;  %v402_v56 = vpack.c.bf16 %v392_v50, %v391_v49  ;;  %v387_v59 = vld [vmem:[%s1790_s7 + $0x30] sm:$0xff] }
  0x50   : > { %v393_v53 = vld [vmem:[%s1790_s7 + $0x60] sm:$0xff]  ;;  %v394_v54 = vld [vmem:[%s1790_s7 + $0x68] sm:$0xff]  ;;  %v399_v57 = vpack.c.bf16 %v386_v52, %v385_v51  ;;  %v388_v60 = vld [vmem:[%s1790_s7 + $0x38] sm:$0xff] }
  0x51   : > { %1302 = vmatpush3.bf16.msra.mxu0 %v445_v28  ;;  %1420 = vmatpush3.bf16.msra.mxu1 %v445_v28  ;;  %v403_v58 = vpack.c.bf16 %v394_v54, %v393_v53  ;;  %v395_v61 = vld [vmem:[%s1790_s7 + $0x70] sm:$0xff]  ;;  %v396_v62 = vld [vmem:[%s1790_s7 + $0x78] sm:$0xff]  ;;  %v400_v63 = vpack.c.bf16 %v388_v60, %v387_v59  ;;  %v423_v5 = vld [vmem:[#allocation2] sm:$0xff] }
  0x52   : > { %1303 = vmatprep.subr.bf16.mxu0 %v444_v31  ;;  %1413 = vmatprep.subr.bf16.mxu1 %v444_v31  ;;  %v404_v0 = vpack.c.bf16 %v396_v62, %v395_v61  ;;  %v425_v1 = vld [vmem:[#allocation2 + $0x10] sm:$0xff]  ;;  %v431_v6 = vld [vmem:[#allocation2 + $0x40] sm:$0xff]  ;;  %v426_v11 = vld [vmem:[#allocation2 + $0x18] sm:$0xff] }
  0x53   : > { %v433_v2 = vld [vmem:[#allocation2 + $0x50] sm:$0xff]  ;;  %v434_v12 = vld [vmem:[#allocation2 + $0x58] sm:$0xff]  ;;  %v424_v17 = vld [vmem:[#allocation2 + $0x8] sm:$0xff] }
  0x54   : > { %v432_v18 = vld [vmem:[#allocation2 + $0x48] sm:$0xff]  ;;  %v429_v23 = vld [vmem:[#allocation2 + $0x30] sm:$0xff]  ;;  %v427_v29 = vld [vmem:[#allocation2 + $0x20] sm:$0xff] }
  0x55   : > { %1304 = vmatpush3.bf16.msra.mxu0 %v444_v31  ;;  %1421 = vmatpush3.bf16.msra.mxu1 %v444_v31  ;;  %v437_v24 = vld [vmem:[#allocation2 + $0x70] sm:$0xff]  ;;  %v435_v30 = vld [vmem:[#allocation2 + $0x60] sm:$0xff]  ;;  %v430_v35 = vld [vmem:[#allocation2 + $0x38] sm:$0xff] }
  0x56   : > { %1305 = vmatprep.subr.bf16.mxu0 %v443_v34  ;;  %1414 = vmatprep.subr.bf16.mxu1 %v443_v34  ;;  %v438_v36 = vld [vmem:[#allocation2 + $0x78] sm:$0xff]  ;;  %v428_v41 = vld [vmem:[#allocation2 + $0x28] sm:$0xff] }
  0x57   : > { %v436_v42 = vld [vmem:[#allocation2 + $0x68] sm:$0xff] }
  0x59   : > { %1306 = vmatpush3.bf16.msra.mxu0 %v443_v34  ;;  %1422 = vmatpush3.bf16.msra.mxu1 %v443_v34 }
  0x5a   : > { %1307 = vmatprep.subr.bf16.mxu0 %v442_v37  ;;  %1415 = vmatprep.subr.bf16.mxu1 %v442_v37 }
  0x5d   : > { %1308 = vmatpush3.bf16.msra.mxu0 %v442_v37  ;;  %1423 = vmatpush3.bf16.msra.mxu1 %v442_v37 }
  0x5e   : > { %1309 = vmatprep.subr.bf16.mxu0 %v441_v40  ;;  %1416 = vmatprep.subr.bf16.mxu1 %v441_v40 }
  0x61   : > { %1310 = vmatpush3.bf16.msra.mxu0 %v441_v40  ;;  %1424 = vmatpush3.bf16.msra.mxu1 %v441_v40 }
  0x62   : > { %1311 = vmatprep.subr.bf16.mxu0 %v440_v43  ;;  %1417 = vmatprep.subr.bf16.mxu1 %v440_v43 }
  0x65   : > { %1312 = vmatpush3.bf16.msra.mxu0 %v440_v43  ;;  %1425 = vmatpush3.bf16.msra.mxu1 %v440_v43 }
  0x66   : > { %1313 = vmatprep.subr.bf16.mxu0 %v439_v46  ;;  %1418 = vmatprep.subr.bf16.mxu1 %v439_v46 }
  0x69   : > { %1314 = vmatpush3.bf16.msra.mxu0 %v439_v46  ;;  %1426 = vmatpush3.bf16.msra.mxu1 %v439_v46 }
  0x6c   : > { %1316 = vmatmul.mubr.bf16.vlgmr.msra.gmra.mxu0 %v398_v55  ;;  %1324 = vmatmul.mubr.bf16.vlgmr.msra.gmra.mxu1 %v402_v56 }
  0x6d   : > { %1319 = vmatprep.mubr.bf16.mxu0 %v399_v57  ;;  %1327 = vmatprep.mubr.bf16.mxu1 %v403_v58 }
  0x74   : > { %1320 = vmatmul.mubr.bf16.gmra.mxu0 %v400_v63  ;;  %1328 = vmatmul.mubr.bf16.gmra.mxu1 %v404_v0 }
 0x12c   : > { %v1317_v3 = vpop.f32.mrf.mxu0  ;;  %v1325_v4 = vpop.f32.mrf.mxu1 }
 0x12d   : > { %v546_v7 = vadd.f32 %v1317_v3, %v425_v1  ;;  %v554_v8 = vadd.f32 %v1325_v4, %v433_v2 }
 0x12e   : > { %v481_v9 = vpop.f32.mrf.mxu0  ;;  %v513_v10 = vpop.f32.mrf.mxu1 }
 0x12f   : > { %563 = vst.msk [vmem:[#allocation2 + $0x10] sm:$0xff] %vm560_vm1, %v546_v7  ;;  %571 = vst.msk [vmem:[#allocation2 + $0x50] sm:$0xff] %vm560_vm1, %v554_v8  ;;  %v544_v13 = vadd.f32 %v481_v9, %v423_v5  ;;  %v552_v14 = vadd.f32 %v513_v10, %v431_v6 }
 0x130   : > { %v1318_v15 = vpop.f32.mrf.mxu0  ;;  %v1326_v16 = vpop.f32.mrf.mxu1 }
 0x131   : > { %561 = vst.msk [vmem:[#allocation2] sm:$0xff] %vm560_vm1, %v544_v13  ;;  %569 = vst.msk [vmem:[#allocation2 + $0x40] sm:$0xff] %vm560_vm1, %v552_v14  ;;  %v547_v19 = vadd.f32 %v1318_v15, %v426_v11  ;;  %v555_v20 = vadd.f32 %v1326_v16, %v434_v12 }
 0x132   : > { %v484_v21 = vpop.f32.mrf.mxu0  ;;  %v516_v22 = vpop.f32.mrf.mxu1 }
 0x133   : > { %564 = vst.msk [vmem:[#allocation2 + $0x18] sm:$0xff] %vm560_vm1, %v547_v19  ;;  %572 = vst.msk [vmem:[#allocation2 + $0x58] sm:$0xff] %vm560_vm1, %v555_v20  ;;  %v545_v25 = vadd.f32 %v484_v21, %v424_v17  ;;  %v553_v26 = vadd.f32 %v516_v22, %v432_v18 }
 0x134   : > { %v1321_v27 = vpop.f32.mrf.mxu0  ;;  %v1329_v28 = vpop.f32.mrf.mxu1 }
 0x135   : > { %562 = vst.msk [vmem:[#allocation2 + $0x8] sm:$0xff] %vm560_vm1, %v545_v25  ;;  %570 = vst.msk [vmem:[#allocation2 + $0x48] sm:$0xff] %vm560_vm1, %v553_v26  ;;  %v550_v31 = vadd.f32 %v1321_v27, %v429_v23  ;;  %v558_v32 = vadd.f32 %v1329_v28, %v437_v24 }
 0x136   : > { %v497_v33 = vpop.f32.mrf.mxu0  ;;  %v529_v34 = vpop.f32.mrf.mxu1 }
 0x137   : > { %567 = vst.msk [vmem:[#allocation2 + $0x30] sm:$0xff] %vm560_vm1, %v550_v31  ;;  %575 = vst.msk [vmem:[#allocation2 + $0x70] sm:$0xff] %vm560_vm1, %v558_v32  ;;  %v548_v37 = vadd.f32 %v497_v33, %v427_v29  ;;  %v556_v38 = vadd.f32 %v529_v34, %v435_v30 }
 0x138   : > { %v1322_v39 = vpop.f32.mrf.mxu0  ;;  %v1330_v40 = vpop.f32.mrf.mxu1 }
 0x139   : > { %565 = vst.msk [vmem:[#allocation2 + $0x20] sm:$0xff] %vm560_vm1, %v548_v37  ;;  %573 = vst.msk [vmem:[#allocation2 + $0x60] sm:$0xff] %vm560_vm1, %v556_v38  ;;  %v551_v43 = vadd.f32 %v1322_v39, %v430_v35  ;;  %v559_v44 = vadd.f32 %v1330_v40, %v438_v36  ;;  %580 = sbr.rel (%p1194_p5) target bundleno = 567 (0x237), region = 86 }
 0x13a   : > { %v500_v45 = vpop.f32.mrf.mxu0  ;;  %v532_v46 = vpop.f32.mrf.mxu1 }
 0x13b   : > { %568 = vst.msk [vmem:[#allocation2 + $0x38] sm:$0xff] %vm560_vm1, %v551_v43  ;;  %576 = vst.msk [vmem:[#allocation2 + $0x78] sm:$0xff] %vm560_vm1, %v559_v44  ;;  %v549_v47 = vadd.f32 %v500_v45, %v428_v41  ;;  %v557_v48 = vadd.f32 %v532_v46, %v436_v42 }
 0x13d   : > { %566 = vst.msk [vmem:[#allocation2 + $0x28] sm:$0xff] %vm560_vm1, %v549_v47  ;;  %574 = vst.msk [vmem:[#allocation2 + $0x68] sm:$0xff] %vm560_vm1, %v557_v48 }
 0x13e   : > { %v596_v49 = vld [vmem:[%s2070_s3 + $0x78] sm:$0xff]  ;;  %v595_v51 = vld [vmem:[%s2070_s3 + $0x70] sm:$0xff]  ;;  %v594_v53 = vld [vmem:[%s2070_s3 + $0x68] sm:$0xff] }
 0x13f   : > { %v588_v50 = vld [vmem:[%s2070_s3 + $0x38] sm:$0xff]  ;;  %1331 = vmatprep.subr.mxu0 %v596_v49  ;;  %v587_v52 = vld [vmem:[%s2070_s3 + $0x30] sm:$0xff]  ;;  %v586_v54 = vld [vmem:[%s2070_s3 + $0x28] sm:$0xff] }
 0x140   : > { %1371 = vmatprep.subr.mxu1 %v588_v50  ;;  %1332 = vmatpush3.msra.mxu0 %v596_v49  ;;  %v593_v55 = vld [vmem:[%s2070_s3 + $0x60] sm:$0xff]  ;;  %v592_v57 = vld [vmem:[%s2070_s3 + $0x58] sm:$0xff]  ;;  %v591_v59 = vld [vmem:[%s2070_s3 + $0x50] sm:$0xff] }
 0x141   : > { %1372 = vmatpush3.msra.mxu1 %v588_v50  ;;  %1333 = vmatprep.subr.mxu0 %v595_v51  ;;  %v585_v56 = vld [vmem:[%s2070_s3 + $0x20] sm:$0xff]  ;;  %v584_v58 = vld [vmem:[%s2070_s3 + $0x18] sm:$0xff]  ;;  %v583_v60 = vld [vmem:[%s2070_s3 + $0x10] sm:$0xff] }
 0x142   : > { %1373 = vmatprep.subr.mxu1 %v587_v52  ;;  %1334 = vmatpush3.msra.mxu0 %v595_v51  ;;  %v590_v61 = vld [vmem:[%s2070_s3 + $0x48] sm:$0xff]  ;;  %v589_v63 = vld [vmem:[%s2070_s3 + $0x40] sm:$0xff]  ;;  %v615_v5 = vld [vmem:[#allocation2 + $0x10] sm:$0xff] }
 0x143   : > { %1374 = vmatpush3.msra.mxu1 %v587_v52  ;;  %1335 = vmatprep.subr.mxu0 %v594_v53  ;;  %v582_v62 = vld [vmem:[%s2070_s3 + $0x8] sm:$0xff]  ;;  %v581_v0 = vld [vmem:[%s2070_s3] sm:$0xff]  ;;  %v599_v6 = vld [vmem:[%s1788_s10 + $0x10] sm:$0xff] }
 0x144   : > { %1375 = vmatprep.subr.mxu1 %v586_v54  ;;  %1336 = vmatpush3.msra.mxu0 %v594_v53  ;;  %v613_v1 = vld [vmem:[#allocation2] sm:$0xff]  ;;  %v614_v3 = vld [vmem:[#allocation2 + $0x8] sm:$0xff]  ;;  %v616_v7 = vld [vmem:[#allocation2 + $0x18] sm:$0xff] }
 0x145   : > { %1376 = vmatpush3.msra.mxu1 %v586_v54  ;;  %1337 = vmatprep.subr.mxu0 %v593_v55  ;;  %v597_v2 = vld [vmem:[%s1788_s10] sm:$0xff]  ;;  %v598_v4 = vld [vmem:[%s1788_s10 + $0x8] sm:$0xff]  ;;  %v600_v8 = vld [vmem:[%s1788_s10 + $0x18] sm:$0xff] }
 0x146   : > { %1377 = vmatprep.subr.mxu1 %v585_v56  ;;  %1338 = vmatpush3.msra.mxu0 %v593_v55  ;;  %v617_v9 = vld [vmem:[#allocation2 + $0x20] sm:$0xff]  ;;  %v618_v11 = vld [vmem:[#allocation2 + $0x28] sm:$0xff]  ;;  %v619_v13 = vld [vmem:[#allocation2 + $0x30] sm:$0xff] }
 0x147   : > { %1378 = vmatpush3.msra.mxu1 %v585_v56  ;;  %1339 = vmatprep.subr.mxu0 %v592_v57  ;;  %v601_v10 = vld [vmem:[%s1788_s10 + $0x20] sm:$0xff]  ;;  %v602_v12 = vld [vmem:[%s1788_s10 + $0x28] sm:$0xff]  ;;  %v603_v14 = vld [vmem:[%s1788_s10 + $0x30] sm:$0xff] }
 0x148   : > { %1379 = vmatprep.subr.mxu1 %v584_v58  ;;  %1340 = vmatpush3.msra.mxu0 %v592_v57  ;;  %v620_v15 = vld [vmem:[#allocation2 + $0x38] sm:$0xff]  ;;  %v621_v17 = vld [vmem:[#allocation2 + $0x40] sm:$0xff]  ;;  %v622_v19 = vld [vmem:[#allocation2 + $0x48] sm:$0xff] }
 0x149   : > { %1380 = vmatpush3.msra.mxu1 %v584_v58  ;;  %1341 = vmatprep.subr.mxu0 %v591_v59  ;;  %v604_v16 = vld [vmem:[%s1788_s10 + $0x38] sm:$0xff]  ;;  %v605_v18 = vld [vmem:[%s1788_s10 + $0x40] sm:$0xff]  ;;  %v606_v20 = vld [vmem:[%s1788_s10 + $0x48] sm:$0xff] }
 0x14a   : > { %1381 = vmatprep.subr.mxu1 %v583_v60  ;;  %1342 = vmatpush3.msra.mxu0 %v591_v59  ;;  %v623_v21 = vld [vmem:[#allocation2 + $0x50] sm:$0xff]  ;;  %v624_v23 = vld [vmem:[#allocation2 + $0x58] sm:$0xff]  ;;  %v625_v25 = vld [vmem:[#allocation2 + $0x60] sm:$0xff] }
 0x14b   : > { %1382 = vmatpush3.msra.mxu1 %v583_v60  ;;  %1343 = vmatprep.subr.mxu0 %v590_v61  ;;  %v607_v22 = vld [vmem:[%s1788_s10 + $0x50] sm:$0xff]  ;;  %v608_v24 = vld [vmem:[%s1788_s10 + $0x58] sm:$0xff]  ;;  %v609_v26 = vld [vmem:[%s1788_s10 + $0x60] sm:$0xff] }
 0x14c   : > { %1383 = vmatprep.subr.mxu1 %v582_v62  ;;  %1344 = vmatpush3.msra.mxu0 %v590_v61  ;;  %v626_v27 = vld [vmem:[#allocation2 + $0x68] sm:$0xff]  ;;  %v627_v29 = vld [vmem:[#allocation2 + $0x70] sm:$0xff]  ;;  %v628_v31 = vld [vmem:[#allocation2 + $0x78] sm:$0xff] }
 0x14d   : > { %1384 = vmatpush3.msra.mxu1 %v582_v62  ;;  %1345 = vmatprep.subr.mxu0 %v589_v63  ;;  %v610_v28 = vld [vmem:[%s1788_s10 + $0x68] sm:$0xff]  ;;  %v611_v30 = vld [vmem:[%s1788_s10 + $0x70] sm:$0xff]  ;;  %v612_v32 = vld [vmem:[%s1788_s10 + $0x78] sm:$0xff] }
 0x14e   : > { %1385 = vmatprep.subr.mxu1 %v581_v0  ;;  %1346 = vmatpush3.msra.mxu0 %v589_v63  ;;  %v1965_v35 = vld [vmem:[%s2071_s4] ss:$0 sm:$0xff] }
 0x14f   : > { %1347 = vmatprep.mubr.msk.f32.mxu0 %vm560_vm1, %v613_v1  ;;  %1386 = vmatpush3.msra.mxu1 %v581_v0 }
 0x150   : > { %1387 = vmatprep.mubr.msk.f32.mxu1 %vm560_vm1, %v597_v2  ;;  %1348 = vmatmul.mubr.msk.f32.vlgmr.msra.gmra.mxu0 %vm560_vm1, %v614_v3 }
 0x151   : > { %1388 = vmatmul.mubr.msk.f32.vlgmr.msra.gmra.mxu1 %vm560_vm1, %v598_v4  ;;  %1350 = vmatprep.mubr.msk.f32.mxu0 %vm560_vm1, %v615_v5 }
 0x152   : > { %1390 = vmatprep.mubr.msk.f32.mxu1 %vm560_vm1, %v599_v6 }
 0x154   : > { %1351 = vmatmul.mubr.msk.f32.gmra.mxu0 %vm560_vm1, %v616_v7 }
 0x155   : > { %1391 = vmatmul.mubr.msk.f32.gmra.mxu1 %vm560_vm1, %v600_v8  ;;  %1353 = vmatprep.mubr.msk.f32.mxu0 %vm560_vm1, %v617_v9 }
 0x156   : > { %1393 = vmatprep.mubr.msk.f32.mxu1 %vm560_vm1, %v601_v10 }
 0x158   : > { %1354 = vmatmul.mubr.msk.f32.gmra.mxu0 %vm560_vm1, %v618_v11 }
 0x159   : > { %1394 = vmatmul.mubr.msk.f32.gmra.mxu1 %vm560_vm1, %v602_v12  ;;  %1356 = vmatprep.mubr.msk.f32.mxu0 %vm560_vm1, %v619_v13 }
 0x15a   : > { %1396 = vmatprep.mubr.msk.f32.mxu1 %vm560_vm1, %v603_v14 }
 0x15c   : > { %1357 = vmatmul.mubr.msk.f32.gmra.mxu0 %vm560_vm1, %v620_v15 }
 0x15d   : > { %1397 = vmatmul.mubr.msk.f32.gmra.mxu1 %vm560_vm1, %v604_v16  ;;  %1359 = vmatprep.mubr.msk.f32.mxu0 %vm560_vm1, %v621_v17 }
 0x15e   : > { %1399 = vmatprep.mubr.msk.f32.mxu1 %vm560_vm1, %v605_v18 }
 0x160   : > { %1360 = vmatmul.mubr.msk.f32.gmra.mxu0 %vm560_vm1, %v622_v19 }
 0x161   : > { %1400 = vmatmul.mubr.msk.f32.gmra.mxu1 %vm560_vm1, %v606_v20  ;;  %1362 = vmatprep.mubr.msk.f32.mxu0 %vm560_vm1, %v623_v21 }
 0x162   : > { %1402 = vmatprep.mubr.msk.f32.mxu1 %vm560_vm1, %v607_v22 }
 0x164   : > { %1363 = vmatmul.mubr.msk.f32.gmra.mxu0 %vm560_vm1, %v624_v23 }
 0x165   : > { %1403 = vmatmul.mubr.msk.f32.gmra.mxu1 %vm560_vm1, %v608_v24  ;;  %1365 = vmatprep.mubr.msk.f32.mxu0 %vm560_vm1, %v625_v25 }
 0x166   : > { %1405 = vmatprep.mubr.msk.f32.mxu1 %vm560_vm1, %v609_v26 }
 0x168   : > { %1366 = vmatmul.mubr.msk.f32.gmra.mxu0 %vm560_vm1, %v626_v27 }
 0x169   : > { %1406 = vmatmul.mubr.msk.f32.gmra.mxu1 %vm560_vm1, %v610_v28  ;;  %1368 = vmatprep.mubr.msk.f32.mxu0 %vm560_vm1, %v627_v29 }
 0x16a   : > { %1408 = vmatprep.mubr.msk.f32.mxu1 %vm560_vm1, %v611_v30 }
 0x16c   : > { %1369 = vmatmul.mubr.msk.f32.gmra.mxu0 %vm560_vm1, %v628_v31 }
 0x16d   : > { %1409 = vmatmul.mubr.msk.f32.gmra.mxu1 %vm560_vm1, %v612_v32 }
 0x210   : > { %v1349_v33 = vpop.f32.mrf.mxu0 }
 0x211   : > { %v1389_v34 = vpop.f32.mrf.mxu1 }
 0x212   : > { %v942_v36 = vadd.f32 %v1389_v34, %v1349_v33  ;;  %v743_v37 = vpop.f32.mrf.mxu0 }
 0x213   : > { %v936_v38 = vpop.f32.mrf.mxu1 }
 0x214   : > { %v1023_v39 = vadd.f32 %v1965_v35, %v942_v36  ;;  %v937_v40 = vadd.f32 %v936_v38, %v743_v37  ;;  %v1352_v41 = vpop.f32.mrf.mxu0 }
 0x215   : > { %v1392_v42 = vpop.f32.mrf.mxu1 }
 0x216   : > { %v1039_v43 = vmax.f32 %v1023_v39, 0.0  ;;  %v1022_v44 = vadd.f32 %v1965_v35, %v937_v40  ;;  %v952_v45 = vadd.f32 %v1392_v42, %v1352_v41  ;;  %v753_v46 = vpop.f32.mrf.mxu0 }
 0x217   : > { %v946_v47 = vpop.f32.mrf.mxu1 }
 0x218   : > { %1055 = vst [vmem:[%s1792_s0 + $0x8] sm:$0xff] %v1039_v43  ;;  %v1038_v48 = vmax.f32 %v1022_v44, 0.0  ;;  %v1025_v49 = vadd.f32 %v1965_v35, %v952_v45  ;;  %v947_v50 = vadd.f32 %v946_v47, %v753_v46  ;;  %v1355_v51 = vpop.f32.mrf.mxu0 }
 0x219   : > { %v1395_v52 = vpop.f32.mrf.mxu1 }
 0x21a   : > { %1054 = vst [vmem:[%s1792_s0] sm:$0xff] %v1038_v48  ;;  %v1041_v53 = vmax.f32 %v1025_v49, 0.0  ;;  %v1024_v54 = vadd.f32 %v1965_v35, %v947_v50  ;;  %v962_v55 = vadd.f32 %v1395_v52, %v1355_v51  ;;  %v763_v56 = vpop.f32.mrf.mxu0 }
 0x21b   : > { %v956_v57 = vpop.f32.mrf.mxu1 }
 0x21c   : > { %1057 = vst [vmem:[%s1792_s0 + $0x18] sm:$0xff] %v1041_v53  ;;  %v1040_v58 = vmax.f32 %v1024_v54, 0.0  ;;  %v1027_v59 = vadd.f32 %v1965_v35, %v962_v55  ;;  %v957_v60 = vadd.f32 %v956_v57, %v763_v56  ;;  %v1358_v61 = vpop.f32.mrf.mxu0 }
 0x21d   : > { %v1398_v62 = vpop.f32.mrf.mxu1 }
 0x21e   : > { %1056 = vst [vmem:[%s1792_s0 + $0x10] sm:$0xff] %v1040_v58  ;;  %v1043_v63 = vmax.f32 %v1027_v59, 0.0  ;;  %v1026_v0 = vadd.f32 %v1965_v35, %v957_v60  ;;  %v972_v1 = vadd.f32 %v1398_v62, %v1358_v61  ;;  %v773_v2 = vpop.f32.mrf.mxu0 }
 0x21f   : > { %v966_v3 = vpop.f32.mrf.mxu1 }
 0x220   : > { %1059 = vst [vmem:[%s1792_s0 + $0x28] sm:$0xff] %v1043_v63  ;;  %v1042_v4 = vmax.f32 %v1026_v0, 0.0  ;;  %v1029_v5 = vadd.f32 %v1965_v35, %v972_v1  ;;  %v967_v6 = vadd.f32 %v966_v3, %v773_v2  ;;  %v1361_v7 = vpop.f32.mrf.mxu0 }
 0x221   : > { %v1401_v8 = vpop.f32.mrf.mxu1 }
 0x222   : > { %1058 = vst [vmem:[%s1792_s0 + $0x20] sm:$0xff] %v1042_v4  ;;  %v1045_v9 = vmax.f32 %v1029_v5, 0.0  ;;  %v1028_v10 = vadd.f32 %v1965_v35, %v967_v6  ;;  %v982_v11 = vadd.f32 %v1401_v8, %v1361_v7  ;;  %v783_v12 = vpop.f32.mrf.mxu0 }
 0x223   : > { %v976_v13 = vpop.f32.mrf.mxu1 }
 0x224   : > { %1061 = vst [vmem:[%s1792_s0 + $0x38] sm:$0xff] %v1045_v9  ;;  %v1044_v14 = vmax.f32 %v1028_v10, 0.0  ;;  %v1031_v15 = vadd.f32 %v1965_v35, %v982_v11  ;;  %v977_v16 = vadd.f32 %v976_v13, %v783_v12  ;;  %v1364_v17 = vpop.f32.mrf.mxu0 }
 0x225   : > { %v1404_v18 = vpop.f32.mrf.mxu1 }
 0x226   : > { %1060 = vst [vmem:[%s1792_s0 + $0x30] sm:$0xff] %v1044_v14  ;;  %v1047_v19 = vmax.f32 %v1031_v15, 0.0  ;;  %v1030_v20 = vadd.f32 %v1965_v35, %v977_v16  ;;  %v992_v21 = vadd.f32 %v1404_v18, %v1364_v17  ;;  %v793_v22 = vpop.f32.mrf.mxu0 }
 0x227   : > { %v986_v23 = vpop.f32.mrf.mxu1 }
 0x228   : > { %1063 = vst [vmem:[%s1792_s0 + $0x48] sm:$0xff] %v1047_v19  ;;  %v1046_v24 = vmax.f32 %v1030_v20, 0.0  ;;  %v1033_v25 = vadd.f32 %v1965_v35, %v992_v21  ;;  %v987_v26 = vadd.f32 %v986_v23, %v793_v22  ;;  %v1367_v27 = vpop.f32.mrf.mxu0 }
 0x229   : > { %v1407_v28 = vpop.f32.mrf.mxu1 }
 0x22a   : > { %1062 = vst [vmem:[%s1792_s0 + $0x40] sm:$0xff] %v1046_v24  ;;  %v1049_v29 = vmax.f32 %v1033_v25, 0.0  ;;  %v1032_v30 = vadd.f32 %v1965_v35, %v987_v26  ;;  %v1002_v31 = vadd.f32 %v1407_v28, %v1367_v27  ;;  %v803_v32 = vpop.f32.mrf.mxu0 }
 0x22b   : > { %v996_v33 = vpop.f32.mrf.mxu1 }
 0x22c   : > { %1065 = vst [vmem:[%s1792_s0 + $0x58] sm:$0xff] %v1049_v29  ;;  %v1048_v34 = vmax.f32 %v1032_v30, 0.0  ;;  %v1035_v36 = vadd.f32 %v1965_v35, %v1002_v31  ;;  %v997_v37 = vadd.f32 %v996_v33, %v803_v32  ;;  %v1370_v38 = vpop.f32.mrf.mxu0 }
 0x22d   : > { %v1410_v39 = vpop.f32.mrf.mxu1 }
 0x22e   : > { %1064 = vst [vmem:[%s1792_s0 + $0x50] sm:$0xff] %v1048_v34  ;;  %v1051_v40 = vmax.f32 %v1035_v36, 0.0  ;;  %v1034_v41 = vadd.f32 %v1965_v35, %v997_v37  ;;  %v1012_v42 = vadd.f32 %v1410_v39, %v1370_v38  ;;  %v813_v43 = vpop.f32.mrf.mxu0 }
 0x22f   : > { %v1006_v44 = vpop.f32.mrf.mxu1 }
 0x230   : > { %1067 = vst [vmem:[%s1792_s0 + $0x68] sm:$0xff] %v1051_v40  ;;  %v1050_v45 = vmax.f32 %v1034_v41, 0.0  ;;  %v1037_v46 = vadd.f32 %v1965_v35, %v1012_v42  ;;  %v1007_v47 = vadd.f32 %v1006_v44, %v813_v43 }
 0x232   : > { %1066 = vst [vmem:[%s1792_s0 + $0x60] sm:$0xff] %v1050_v45  ;;  %v1053_v48 = vmax.f32 %v1037_v46, 0.0  ;;  %v1036_v49 = vadd.f32 %v1965_v35, %v1007_v47 }
 0x234   : > { %1069 = vst [vmem:[%s1792_s0 + $0x78] sm:$0xff] %v1053_v48  ;;  %v1052_v50 = vmax.f32 %v1036_v49, 0.0 }
 0x236   : > { %1068 = vst [vmem:[%s1792_s0 + $0x70] sm:$0xff] %v1052_v50 }
 0x237 PF: > { %s1234_s10 = sshll.u32 %s1613_s24, 11  ;;  %s1084_s17 = sshll.u32 %s1792_s0, 4  ;;  %s2006_s17 = int_to_ptr.vmem [resolvable:$true] %s1084_s17 }
 0x238   : > { %s2003_s6 = scalar_lea.hbm %s2072_s5, %s1234_s10  ;;  %s2010_s23 = scalar_lea.sflag [#allocation5], %s348_s9 }
 0x239   : > { %s1517_s28 = scalar_lea.vmem %s2006_s17, 2048  ;;  %s1628_s24 = smov [#allocation4]  }
 0x23a   : > { %p1518_p6 = scmp.ne.s32.totalorder %s2006_s17, %s1517_s28  ;;  %s1521_s29 = sshll.u32 %s1628_s24, 4  ;;  %s1522_s29 = int_to_ptr.vmem [resolvable:$false] %s1521_s29 }
 0x23b   : > { %s1523_s8 = scalar_lea.vmem %s1522_s29, 4096  ;;  %p1524_p10 = scmp.lt.s32.totalorder %s2006_s17, %s1522_s29 }
 0x23c   : > { %p1519_p8 = pnand %p1518_p6, %p1733_p7  ;;  %p1525_p11 = scmp.lt.s32.totalorder %s1523_s8, %s1517_s28 }
 0x23e   : > { %p1520_p9 = pneg %p1519_p8  ;;  %p1526_p13 = por %p1525_p11, %p1524_p10 }
 0x240   : > { %p1527_p0 = pnand %p1526_p13, %p1520_p9 }
 0x242   : > { %1530 = shalt.err (!%p1527_p0)
}
 0x243   : > { %s1531_s0 = scalar_lea.hbm %s2003_s6, 2048  ;;  %s1535_s13 = scalar_lea.hbm %s2072_s5, 4096 }
 0x244   : > { %p1532_p1 = scmp.ne.s32.totalorder %s2003_s6, %s1531_s0  ;;  %p1536_p4 = scmp.lt.s32.totalorder %s2003_s6, %s2072_s5 }
 0x245   : > { %p1537_p5 = scmp.lt.s32.totalorder %s1535_s13, %s1531_s0 }
 0x246   : > { %p1533_p2 = pnand %p1532_p1, %p1733_p7 }
 0x247   : > { %p1538_p6 = por %p1537_p5, %p1536_p4 }
 0x248   : > { %p1534_p3 = pneg %p1533_p2 }
 0x24a   : > { %p1539_p8 = pnand %p1538_p6, %p1534_p3 }
 0x24c   : > { %1542 = shalt.err (!%p1539_p8)
}
 0x24d   : > { %s1629_s21 = smov 128   ;;  %s1630_s28 = smov 8  }
 0x24e   : > { %1427 = dma.vmem_to_hbm [thread:$0]  (%p1733_p7), %s2006_s17, 2048, %s2003_s6, %s2010_s23, %s1629_s21, %s1629_s21, %s1630_s28  }
 0x24f PF: > { %p1433_p9 = scmp.ge.s32.totalorder %s1625_s27, 2  ;;  %s1099_s24 = sand.u32 1, %s1589_s18  }
 0x250   : > { %s1100_s29 = scalar_lea.sflag [#allocation5], %s1099_s24 }
 0x251   : > { %p1430_p10 = pnand %p1433_p9, %p1741_p12 }
 0x253   : > { %p1431_p11 = pneg %p1430_p10 }
 0x255   : > { %1584 = dma.done.wait (%p1431_p11), %s1100_s29, 2048  }
 0x256   : > { %1586 = vsyncadd (%p1431_p11), %s1100_s29, 4294965248  ;;  %s18_s27 = sadd.s32 1, %s1625_s27   ;;  %s2080_s11 = sld [smem:[#allocation7_spill]] }
 0x257   : > { %p15_p13 = scmp.ge.s32.totalorder %s18_s27, 6   ;;  %s2081_s18 = smov %s1593_s19 }
 0x258   : > { %s2082_s19 = smov %s1597_s20  ;;  %s2083_s20 = smov %s1746_s15 }
 0x259   : > { %s2084_s21 = smov %s1605_s22  ;;  %s2085_s22 = smov %s1749_s16 }
 0x25a   : > { %s2086_s23 = smov %s1617_s25  ;;  %s2087_s24 = smov %s1621_s26 }
 0x25b   : > { %s2088_s25 = smov %s2091_s30  ;;  %17 = sbr.rel (!%p15_p13) target bundleno = 8 (0x8), region = 130 }
 0x25c   : > { %s2089_s26 = smov %s2080_s11 }
 0x260   :  { %1105 = vsyncpa [#allocation5], 1 }
 0x261   :  { %1107 = vsyncpa [#allocation5 + $0x1], 1 }

</bundles_post_ra>
